<compile_context>
chip_gen: v6e
topology: v6e:2x2x1
jax: 0.10.0
libtpu: 0.0.40
codegen_flags: <defaults>
</compile_context>

<pallas_src>
import math

import jax
import jax.numpy as jnp
from jax import lax
from jax.experimental import pallas as pl
from jax.experimental.pallas import tpu as pltpu

NHIDDEN = 11
IN_FEATURES = 784
OUT_FEATURES = 5


def _model_kernel(x_ref, w_ref, o_ref):
    # Cast in-kernel (no-op for f32 inputs; halves HBM traffic when x arrives bf16).
    x = x_ref[...].astype(jnp.float32)
    # Single fused matmul: (TB, 784) @ (784, 5) in canonical (M,K)x(K,N) form,
    # contracting dim 1 of x with dim 0 of the weight -> no operand re-layout.
    o_ref[...] = lax.dot_general(
        x,
        w_ref[...],
        dimension_numbers=(((1,), (0,)), ((), ())),
        preferred_element_type=jnp.float32,
    ).astype(o_ref.dtype)


def model_forward(x, w_fc1, readout_weights, t, *, block_b=1024, vmem_limit_bytes=None):
    """Forward pass of `Model`.

    x               : any shape with 784 trailing elements per sample (f32 or bf16)
    w_fc1           : (NHIDDEN, 784)
    readout_weights : (2, OUT_FEATURES, NHIDDEN)  stacked readout1/readout2 weights
    t               : readout index (0 or 1), Python int
    block_b         : batch tile size (rows per grid step).
                      v5e/v6e: 1024 is near the HBM roofline.
                      v7x: 2048-4096 amortizes the per-step overhead against the
                      faster HBM (vmem_limit is sized automatically below).
    """
    x2d = x.reshape(-1, IN_FEATURES)
    B = x2d.shape[0]

    # Weight fusion in plain JAX (glue, one-time):
    #   (x @ W_fc1.T) @ W_ro.T == x @ (W_ro @ W_fc1).T
    w_fused = (readout_weights[t] @ w_fc1).T  # (784, 5), canonical (K, N) layout
    w_fused = w_fused.astype(jnp.float32)

    # Batch tile: full batch if small, else a multiple of 8 (sublane constraint).
    tb = B if B <= block_b else max(8, (block_b // 8) * 8)
    grid = (pl.cdiv(B, tb),)

    if vmem_limit_bytes is None:
        # Explicit scoped-VMEM budget so big tiles don't depend on per-chip defaults
        # (v5e default scoped limit is 16 MiB; v7x physical VMEM is only 64 MiB/TC).
        itemsize = jnp.dtype(x2d.dtype).itemsize
        x_bytes = 2 * tb * IN_FEATURES * itemsize  # double-buffered input tile
        o_bytes = 2 * tb * 128 * 4                 # lane-padded (5 -> 128) output tile
        w_bytes = IN_FEATURES * 128 * 4            # lane-padded resident fused weight
        est = x_bytes + o_bytes + w_bytes + (1 << 20)
        vmem_limit_bytes = int(min(max(2 * est, 16 << 20), 48 << 20))

    return pl.pallas_call(
        _model_kernel,
        out_shape=jax.ShapeDtypeStruct((B, OUT_FEATURES), jnp.float32),
        grid_spec=pltpu.PrefetchScalarGridSpec(
            num_scalar_prefetch=0,
            grid=grid,
            in_specs=[
                # x: stream contiguous batch tiles.
                pl.BlockSpec((tb, IN_FEATURES), lambda i: (i, 0)),
                # fused weight: tiny (~16 KiB), resident across all grid steps.
                pl.BlockSpec((IN_FEATURES, OUT_FEATURES), lambda i: (0, 0)),
            ],
            out_specs=pl.BlockSpec((tb, OUT_FEATURES), lambda i: (i, 0)),
        ),
        compiler_params=pltpu.CompilerParams(
            # Independent batch tiles -> megacore sharding on v7x (no-op on 1-TC chips).
            dimension_semantics=("parallel",),
            vmem_limit_bytes=vmem_limit_bytes,
        ),
    )(x2d, w_fused)


def init_params(key):
    """Deterministic parameter init mirroring the PyTorch module's shapes.

    fc1.weight   ~ kaiming_uniform(a=sqrt(5))  -> U(-1/sqrt(fan_in), 1/sqrt(fan_in))
    readout[i]   ~ nn.Linear default           -> U(-1/sqrt(fan_in), 1/sqrt(fan_in))
    """
    k1, k2, k3 = jax.random.split(key, 3)
    bound_fc1 = 1.0 / math.sqrt(IN_FEATURES)
    w_fc1 = jax.random.uniform(
        k1, (NHIDDEN, IN_FEATURES), jnp.float32, -bound_fc1, bound_fc1
    )
    bound_ro = 1.0 / math.sqrt(NHIDDEN)
    w_ro1 = jax.random.uniform(
        k2, (OUT_FEATURES, NHIDDEN), jnp.float32, -bound_ro, bound_ro
    )
    w_ro2 = jax.random.uniform(
        k3, (OUT_FEATURES, NHIDDEN), jnp.float32, -bound_ro, bound_ro
    )
    readout_weights = jnp.stack([w_ro1, w_ro2], axis=0)  # (2, 5, NHIDDEN)
    # filter / anti_filter buffers (identity) exist in the module but only participate
    # in the custom backward pass, not in forward compute.
    # TODO(synk): GradFilterMatmul custom backward + update_filter (scipy orth/
    # null_space) are training-time only and not part of this forward kernel.
    filt = jnp.eye(NHIDDEN, dtype=jnp.float32)
    anti_filt = jnp.eye(NHIDDEN, dtype=jnp.float32)
    return w_fc1, readout_weights, filt, anti_filt


if __name__ == "__main__":
    key = jax.random.PRNGKey(0)
    kx, kp = jax.random.split(key)

    # Small MNIST-like batch: (B, 1, 28, 28) -> flattened to (B, 784) in forward.
    B = 16
    x = jax.random.normal(kx, (B, 1, 28, 28), dtype=jnp.float32)

    w_fc1, readout_weights, filt, anti_filt = init_params(kp)

    x2d = x.reshape(-1, IN_FEATURES)
    ok = True
    for t in (0, 1):
        # Small batch tile so the test exercises the grid (2 steps of 8 rows).
        out = model_forward(x, w_fc1, readout_weights, t, block_b=8)
        out = jax.block_until_ready(out)
        ref = (x2d @ w_fc1.T) @ readout_weights[t].T
        ok = ok and out.shape == (B, OUT_FEATURES)
        ok = ok and bool(jnp.allclose(out, ref, atol=1e-4, rtol=1e-4))

    # Also exercise the default single-tile path (tb == B).
    out_full = jax.block_until_ready(model_forward(x, w_fc1, readout_weights, 0))
    ref_full = (x2d @ w_fc1.T) @ readout_weights[0].T
    ok = ok and bool(jnp.allclose(out_full, ref_full, atol=1e-4, rtol=1e-4))

    assert ok
    print("KERNEL_OK")
</pallas_src>

<mosaic_0001>
module attributes {stable_mosaic.version = 11 : i64} {
  func.func @_model_kernel(%arg0: i32, %arg1: memref<8x784xf32, #tpu.memory_space<vmem>>, %arg2: memref<784x5xf32, #tpu.memory_space<vmem>>, %arg3: memref<8x5xf32, #tpu.memory_space<vmem>>) attributes {dimension_semantics = [#tpu.dimension_semantics<parallel>], iteration_bounds = array<i64: 2>, scalar_prefetch = 0 : i64, scratch_operands = 0 : i64, tpu.core_type = #tpu.core_type<tc>, window_params = [{transform_indices = @transform_0, window_bounds = array<i64: 8, 784>}, {pipeline_mode = #tpu.pipeline_mode<synchronous>, transform_indices = @transform_1, window_bounds = array<i64: 784, 5>}, {transform_indices = @transform_2, window_bounds = array<i64: 8, 5>}]} {
    %c0 = arith.constant 0 : index
    %c0_0 = arith.constant 0 : index
    %0 = vector.load %arg1[%c0, %c0_0] : memref<8x784xf32, #tpu.memory_space<vmem>>, vector<8x784xf32>
    %c0_1 = arith.constant 0 : index
    %c0_2 = arith.constant 0 : index
    %1 = vector.load %arg2[%c0_1, %c0_2] : memref<784x5xf32, #tpu.memory_space<vmem>>, vector<784x5xf32>
    %cst = arith.constant dense<0.000000e+00> : vector<8x5xf32>
    %2 = tpu.matmul %0, %1, %cst {dimension_numbers = #tpu.dot_dimension_numbers<[1], [0], [0], [1], [0, 0, 1, 1], [], []>} : vector<8x784xf32>, vector<784x5xf32>, vector<8x5xf32> -> vector<8x5xf32>
    %c0_3 = arith.constant 0 : index
    %c0_4 = arith.constant 0 : index
    %3 = vector.load %arg3[%c0_3, %c0_4] : memref<8x5xf32, #tpu.memory_space<vmem>>, vector<8x5xf32>
    tpu.vector_store %arg3[%c0_3, %c0_4], %2 {strides = array<i32>} : memref<8x5xf32, #tpu.memory_space<vmem>>, vector<8x5xf32>,
    return
  }
  func.func @transform_0(%arg0: i32) -> (i32, i32) {
    %c0_i32 = arith.constant 0 : i32
    %c0_i32_0 = arith.constant 0 : i32
    return %arg0, %c0_i32 : i32, i32
  }
  func.func @transform_1(%arg0: i32) -> (i32, i32) {
    %c0_i32 = arith.constant 0 : i32
    %c0_i32_0 = arith.constant 0 : i32
    %c0_i32_1 = arith.constant 0 : i32
    return %c0_i32, %c0_i32_0 : i32, i32
  }
  func.func @transform_2(%arg0: i32) -> (i32, i32) {
    %c0_i32 = arith.constant 0 : i32
    %c0_i32_0 = arith.constant 0 : i32
    return %arg0, %c0_i32 : i32, i32
  }
}

</mosaic_0001>

<bundles_post_ra>
// kernel: tpu_custom_call.1
= control target key start
LH: loop header
LB: loop body
LE: loop exit
PB: predicated region body
PF: predicated region fallthrough
CT: control target
= control target key end

     0   :  { %s747_s9 = smov 0   ;;  %s1081_s0 = inlined_call_operand.vmem [shape: f32[16,784], index: 0, kind: input, shape index: {}]   ;;  %s1082_s1 = inlined_call_operand.vmem [shape: f32[784,5], index: 1, kind: input, shape index: {}]   ;;  %s1083_s2 = inlined_call_operand.vmem [shape: f32[16,5], index: 2, kind: output, shape index: {}]  }
   0x1 LB: > { %s586_s10 = sadd.s32 4294967295, %s728_s9   ;;  %p590_p0 = scmp.ge.s32.totalorder %s728_s9, 1  ;;  %s728_s9 = sphi %s747_s9, %s12_s9  }
   0x2   : > { %p112_p1 = scmp.lt.s32.totalorder %s728_s9, 3 }
   0x4   : > { %p113_p2 = pnand %p590_p0, %p112_p1 }
   0x5   : > { %p859_p3 = scmp.lt.s32.totalorder (!%p113_p2), %s586_s10, 1 }
   0x6   : > { %116 = sbr.rel (%p113_p2) target bundleno = 281 (0x119), region = 28 }
   0xb   : > { %v180_v0 = vld [vmem:[%s1082_s1 + $0xf8] sm:$0xff]  ;;  %v179_v4 = vld [vmem:[%s1082_s1 + $0xf0] sm:$0xff]  ;;  %v178_v8 = vld [vmem:[%s1082_s1 + $0xe8] sm:$0xff]  ;;  %s1086_s10 = smov (!%p859_p3, %s586_s10), 1  ;;  %vm247_vm0 = vcmask 130048   ;;  %vm731_vm1 = vmmov 0  }
   0xc   : > { %v212_v1 = vld [vmem:[%s1082_s1 + $0x1f8] sm:$0xff]  ;;  %596 = vmatprep.subr.mxu0 %v180_v0  ;;  %v211_v5 = vld [vmem:[%s1082_s1 + $0x1f0] sm:$0xff]  ;;  %v210_v9 = vld [vmem:[%s1082_s1 + $0x1e8] sm:$0xff]  ;;  %s711_s6 = smul.u32 56, %s1086_s10  ;;  %s592_s5 = sshll.u32 %s1086_s10, 3  ;;  %vm531_vm2 = vcmask 39936  }
   0xd   : > { %v164_v2 = vld [vmem:[%s1082_s1 + $0x78] sm:$0xff]  ;;  %631 = vmatprep.subr.mxu1 %v212_v1  ;;  %v163_v6 = vld [vmem:[%s1082_s1 + $0x70] sm:$0xff]  ;;  %v162_v10 = vld [vmem:[%s1082_s1 + $0x68] sm:$0xff]  ;;  %s141_s7 = scalar_lea.vmem %s1083_s2, %s592_s5 }
   0xe   : > { %v196_v3 = vld [vmem:[%s1082_s1 + $0x178] sm:$0xff]  ;;  %597 = vmatpush3.msra.mxu0 %v164_v2  ;;  %v195_v7 = vld [vmem:[%s1082_s1 + $0x170] sm:$0xff]  ;;  %v194_v11 = vld [vmem:[%s1082_s1 + $0x168] sm:$0xff]  ;;  %s945_s27 = scalar_lea.vmem %s1081_s0, %s711_s6 }
   0xf   : > { %632 = vmatpush3.msra.mxu1 %v196_v3  ;;  %598 = vmatprep.subr.mxu0 %v179_v4  ;;  %v177_v12 = vld [vmem:[%s1082_s1 + $0xe0] sm:$0xff]  ;;  %v176_v16 = vld [vmem:[%s1082_s1 + $0xd8] sm:$0xff]  ;;  %v175_v20 = vld [vmem:[%s1082_s1 + $0xd0] sm:$0xff] }
  0x10   : > { %633 = vmatprep.subr.mxu1 %v211_v5  ;;  %599 = vmatpush3.msra.mxu0 %v163_v6  ;;  %v209_v13 = vld [vmem:[%s1082_s1 + $0x1e0] sm:$0xff]  ;;  %v208_v17 = vld [vmem:[%s1082_s1 + $0x1d8] sm:$0xff]  ;;  %v207_v21 = vld [vmem:[%s1082_s1 + $0x1d0] sm:$0xff] }
  0x11   : > { %634 = vmatpush3.msra.mxu1 %v195_v7  ;;  %600 = vmatprep.subr.mxu0 %v178_v8  ;;  %v161_v14 = vld [vmem:[%s1082_s1 + $0x60] sm:$0xff]  ;;  %v160_v18 = vld [vmem:[%s1082_s1 + $0x58] sm:$0xff]  ;;  %v159_v22 = vld [vmem:[%s1082_s1 + $0x50] sm:$0xff] }
  0x12   : > { %635 = vmatprep.subr.mxu1 %v210_v9  ;;  %v193_v15 = vld [vmem:[%s1082_s1 + $0x160] sm:$0xff]  ;;  %601 = vmatpush3.msra.mxu0 %v162_v10  ;;  %v192_v19 = vld [vmem:[%s1082_s1 + $0x158] sm:$0xff]  ;;  %v191_v23 = vld [vmem:[%s1082_s1 + $0x150] sm:$0xff] }
  0x13   : > { %636 = vmatpush3.msra.mxu1 %v194_v11  ;;  %602 = vmatprep.subr.mxu0 %v177_v12  ;;  %v174_v24 = vld [vmem:[%s1082_s1 + $0xc8] sm:$0xff]  ;;  %v173_v28 = vld [vmem:[%s1082_s1 + $0xc0] sm:$0xff]  ;;  %v172_v32 = vld [vmem:[%s1082_s1 + $0xb8] sm:$0xff]  ;;  %v730_v11 = vmov 0.0  }
  0x14   : > { %637 = vmatprep.subr.mxu1 %v209_v13  ;;  %603 = vmatpush3.msra.mxu0 %v161_v14  ;;  %v206_v25 = vld [vmem:[%s1082_s1 + $0x1c8] sm:$0xff]  ;;  %v205_v29 = vld [vmem:[%s1082_s1 + $0x1c0] sm:$0xff]  ;;  %v204_v33 = vld [vmem:[%s1082_s1 + $0x1b8] sm:$0xff] }
  0x15   : > { %638 = vmatpush3.msra.mxu1 %v193_v15  ;;  %604 = vmatprep.subr.mxu0 %v176_v16  ;;  %v158_v26 = vld [vmem:[%s1082_s1 + $0x48] sm:$0xff]  ;;  %v157_v30 = vld [vmem:[%s1082_s1 + $0x40] sm:$0xff]  ;;  %v156_v34 = vld [vmem:[%s1082_s1 + $0x38] sm:$0xff] }
  0x16   : > { %639 = vmatprep.subr.mxu1 %v208_v17  ;;  %605 = vmatpush3.msra.mxu0 %v160_v18  ;;  %v190_v27 = vld [vmem:[%s1082_s1 + $0x148] sm:$0xff]  ;;  %v189_v31 = vld [vmem:[%s1082_s1 + $0x140] sm:$0xff]  ;;  %v188_v35 = vld [vmem:[%s1082_s1 + $0x138] sm:$0xff] }
  0x17   : > { %640 = vmatpush3.msra.mxu1 %v192_v19  ;;  %606 = vmatprep.subr.mxu0 %v175_v20  ;;  %v171_v36 = vld [vmem:[%s1082_s1 + $0xb0] sm:$0xff]  ;;  %v170_v40 = vld [vmem:[%s1082_s1 + $0xa8] sm:$0xff]  ;;  %v169_v44 = vld [vmem:[%s1082_s1 + $0xa0] sm:$0xff] }
  0x18   : > { %641 = vmatprep.subr.mxu1 %v207_v21  ;;  %607 = vmatpush3.msra.mxu0 %v159_v22  ;;  %v203_v37 = vld [vmem:[%s1082_s1 + $0x1b0] sm:$0xff]  ;;  %v202_v41 = vld [vmem:[%s1082_s1 + $0x1a8] sm:$0xff]  ;;  %v201_v45 = vld [vmem:[%s1082_s1 + $0x1a0] sm:$0xff] }
  0x19   : > { %642 = vmatpush3.msra.mxu1 %v191_v23  ;;  %608 = vmatprep.subr.mxu0 %v174_v24  ;;  %v155_v38 = vld [vmem:[%s1082_s1 + $0x30] sm:$0xff]  ;;  %v154_v42 = vld [vmem:[%s1082_s1 + $0x28] sm:$0xff]  ;;  %v153_v46 = vld [vmem:[%s1082_s1 + $0x20] sm:$0xff] }
  0x1a   : > { %643 = vmatprep.subr.mxu1 %v206_v25  ;;  %609 = vmatpush3.msra.mxu0 %v158_v26  ;;  %v187_v39 = vld [vmem:[%s1082_s1 + $0x130] sm:$0xff]  ;;  %v186_v43 = vld [vmem:[%s1082_s1 + $0x128] sm:$0xff]  ;;  %v185_v47 = vld [vmem:[%s1082_s1 + $0x120] sm:$0xff] }
  0x1b   : > { %644 = vmatpush3.msra.mxu1 %v190_v27  ;;  %610 = vmatprep.subr.mxu0 %v173_v28  ;;  %v168_v48 = vld [vmem:[%s1082_s1 + $0x98] sm:$0xff]  ;;  %v167_v52 = vld [vmem:[%s1082_s1 + $0x90] sm:$0xff]  ;;  %v166_v56 = vld [vmem:[%s1082_s1 + $0x88] sm:$0xff] }
  0x1c   : > { %645 = vmatprep.subr.mxu1 %v205_v29  ;;  %611 = vmatpush3.msra.mxu0 %v157_v30  ;;  %v200_v49 = vld [vmem:[%s1082_s1 + $0x198] sm:$0xff]  ;;  %v199_v53 = vld [vmem:[%s1082_s1 + $0x190] sm:$0xff]  ;;  %v198_v57 = vld [vmem:[%s1082_s1 + $0x188] sm:$0xff] }
  0x1d   : > { %646 = vmatpush3.msra.mxu1 %v189_v31  ;;  %612 = vmatprep.subr.mxu0 %v172_v32  ;;  %v152_v50 = vld [vmem:[%s1082_s1 + $0x18] sm:$0xff]  ;;  %v151_v54 = vld [vmem:[%s1082_s1 + $0x10] sm:$0xff]  ;;  %v150_v58 = vld [vmem:[%s1082_s1 + $0x8] sm:$0xff] }
  0x1e   : > { %647 = vmatprep.subr.mxu1 %v204_v33  ;;  %613 = vmatpush3.msra.mxu0 %v156_v34  ;;  %v184_v51 = vld [vmem:[%s1082_s1 + $0x118] sm:$0xff]  ;;  %v183_v55 = vld [vmem:[%s1082_s1 + $0x110] sm:$0xff]  ;;  %v182_v59 = vld [vmem:[%s1082_s1 + $0x108] sm:$0xff] }
  0x1f   : > { %648 = vmatpush3.msra.mxu1 %v188_v35  ;;  %614 = vmatprep.subr.mxu0 %v171_v36  ;;  %v165_v60 = vld [vmem:[%s1082_s1 + $0x80] sm:$0xff]  ;;  %v143_v63 = vld [vmem:[%s945_s27 + $0x8] sm:$0xff]  ;;  %v145_v1 = vld [vmem:[%s945_s27 + $0x18] sm:$0xff] }
  0x20   : > { %649 = vmatprep.subr.mxu1 %v203_v37  ;;  %615 = vmatpush3.msra.mxu0 %v155_v38  ;;  %v197_v61 = vld [vmem:[%s1082_s1 + $0x180] sm:$0xff]  ;;  %v144_v3 = vld [vmem:[%s945_s27 + $0x10] sm:$0xff]  ;;  %v244_v4 = vld [vmem:[%s1082_s1 + $0x2f8] sm:$0xff] }
  0x21   : > { %650 = vmatpush3.msra.mxu1 %v187_v39  ;;  %616 = vmatprep.subr.mxu0 %v170_v40  ;;  %v149_v62 = vld [vmem:[%s1082_s1] sm:$0xff]  ;;  %v228_v5 = vld [vmem:[%s1082_s1 + $0x278] sm:$0xff]  ;;  %v147_v6 = vld [vmem:[%s945_s27 + $0x28] sm:$0xff] }
  0x22   : > { %651 = vmatprep.subr.mxu1 %v202_v41  ;;  %617 = vmatpush3.msra.mxu0 %v154_v42  ;;  %v181_v0 = vld [vmem:[%s1082_s1 + $0x100] sm:$0xff]  ;;  %v243_v7 = vld [vmem:[%s1082_s1 + $0x2f0] sm:$0xff]  ;;  %v246_v8 = vld [vmem:[%s1082_s1 + $0x308] sm:$0xff] }
  0x23   : > { %652 = vmatpush3.msra.mxu1 %v186_v43  ;;  %618 = vmatprep.subr.mxu0 %v169_v44  ;;  %v142_v2 = vld [vmem:[%s945_s27] sm:$0xff]  ;;  %v227_v9 = vld [vmem:[%s1082_s1 + $0x270] sm:$0xff]  ;;  %v242_v10 = vld [vmem:[%s1082_s1 + $0x2e8] sm:$0xff] }
  0x24   : > { %653 = vmatprep.subr.mxu1 %v201_v45  ;;  %619 = vmatpush3.msra.mxu0 %v153_v46  ;;  %v245_v12 = vld [vmem:[%s1082_s1 + $0x300] sm:$0xff]  ;;  %v226_v13 = vld [vmem:[%s1082_s1 + $0x268] sm:$0xff]  ;;  %v148_v15 = vld [vmem:[%s945_s27 + $0x30] sm:$0xff] }
  0x25   : > { %654 = vmatpush3.msra.mxu1 %v185_v47  ;;  %620 = vmatprep.subr.mxu0 %v168_v48  ;;  %v241_v14 = vld [vmem:[%s1082_s1 + $0x2e0] sm:$0xff]  ;;  %v240_v17 = vld [vmem:[%s1082_s1 + $0x2d8] sm:$0xff]  ;;  %v239_v19 = vld [vmem:[%s1082_s1 + $0x2d0] sm:$0xff] }
  0x26   : > { %655 = vmatprep.subr.mxu1 %v200_v49  ;;  %621 = vmatpush3.msra.mxu0 %v152_v50  ;;  %v225_v16 = vld [vmem:[%s1082_s1 + $0x260] sm:$0xff]  ;;  %v224_v18 = vld [vmem:[%s1082_s1 + $0x258] sm:$0xff]  ;;  %v223_v20 = vld [vmem:[%s1082_s1 + $0x250] sm:$0xff] }
  0x27   : > { %656 = vmatpush3.msra.mxu1 %v184_v51  ;;  %622 = vmatprep.subr.mxu0 %v167_v52  ;;  %v238_v21 = vld [vmem:[%s1082_s1 + $0x2c8] sm:$0xff]  ;;  %v237_v23 = vld [vmem:[%s1082_s1 + $0x2c0] sm:$0xff]  ;;  %v236_v25 = vld [vmem:[%s1082_s1 + $0x2b8] sm:$0xff] }
  0x28   : > { %657 = vmatprep.subr.mxu1 %v199_v53  ;;  %623 = vmatpush3.msra.mxu0 %v151_v54  ;;  %v222_v22 = vld [vmem:[%s1082_s1 + $0x248] sm:$0xff]  ;;  %v221_v24 = vld [vmem:[%s1082_s1 + $0x240] sm:$0xff]  ;;  %v220_v26 = vld [vmem:[%s1082_s1 + $0x238] sm:$0xff] }
  0x29   : > { %658 = vmatpush3.msra.mxu1 %v183_v55  ;;  %624 = vmatprep.subr.mxu0 %v166_v56  ;;  %v235_v27 = vld [vmem:[%s1082_s1 + $0x2b0] sm:$0xff]  ;;  %v234_v29 = vld [vmem:[%s1082_s1 + $0x2a8] sm:$0xff]  ;;  %v233_v31 = vld [vmem:[%s1082_s1 + $0x2a0] sm:$0xff] }
  0x2a   : > { %659 = vmatprep.subr.mxu1 %v198_v57  ;;  %625 = vmatpush3.msra.mxu0 %v150_v58  ;;  %v219_v28 = vld [vmem:[%s1082_s1 + $0x230] sm:$0xff]  ;;  %v218_v30 = vld [vmem:[%s1082_s1 + $0x228] sm:$0xff]  ;;  %v217_v32 = vld [vmem:[%s1082_s1 + $0x220] sm:$0xff] }
  0x2b   : > { %660 = vmatpush3.msra.mxu1 %v182_v59  ;;  %626 = vmatprep.subr.mxu0 %v165_v60  ;;  %v232_v33 = vld [vmem:[%s1082_s1 + $0x298] sm:$0xff]  ;;  %v231_v35 = vld [vmem:[%s1082_s1 + $0x290] sm:$0xff]  ;;  %v230_v37 = vld [vmem:[%s1082_s1 + $0x288] sm:$0xff] }
  0x2c   : > { %661 = vmatprep.subr.mxu1 %v197_v61  ;;  %627 = vmatpush3.msra.mxu0 %v149_v62  ;;  %v216_v34 = vld [vmem:[%s1082_s1 + $0x218] sm:$0xff]  ;;  %v215_v36 = vld [vmem:[%s1082_s1 + $0x210] sm:$0xff]  ;;  %v214_v38 = vld [vmem:[%s1082_s1 + $0x208] sm:$0xff] }
  0x2d   : > { %315 = vmatprep.mubr.f32.mxu0 %v143_v63  ;;  %662 = vmatpush3.msra.mxu1 %v181_v0  ;;  %v229_v39 = vld [vmem:[%s1082_s1 + $0x280] sm:$0xff] }
  0x2e   : > { %385 = vmatprep.mubr.f32.mxu1 %v145_v1  ;;  %316 = vmatmul.mubr.f32.vlgmr.msra.gmra.mxu0 %v142_v2  ;;  %v213_v40 = vld [vmem:[%s1082_s1 + $0x200] sm:$0xff] }
  0x2f   : > { %386 = vmatmul.mubr.f32.vlgmr.msra.gmra.mxu1 %v144_v3  ;;  %666 = vmatprep.subr.mxu0 %v244_v4  ;;  %v146_v41 = vld [vmem:[%s945_s27 + $0x20] sm:$0xff] }
  0x30   : > { %455 = vmatprep.mubr.f32.mxu0 %v147_v6  ;;  %667 = vmatpush3.msra.mxu0 %v228_v5 }
  0x31   : > { %704 = vmatprep.subr.mxu1 %v730_v11  ;;  %668 = vmatprep.subr.mxu0 %v243_v7 }
  0x32   : > { %705 = vmatpush3.msra.mxu1 %v246_v8  ;;  %669 = vmatpush3.msra.mxu0 %v227_v9 }
  0x33   : > { %706 = vmatprep.subr.mxu1 %v730_v11  ;;  %670 = vmatprep.subr.mxu0 %v242_v10 }
  0x34   : > { %707 = vmatpush3.msra.mxu1 %v245_v12  ;;  %671 = vmatpush3.msra.mxu0 %v226_v13 }
  0x35   : > { %708 = vmatprep.mubr.msk.f32.mxu1 %vm731_vm1, %v730_v11  ;;  %672 = vmatprep.subr.mxu0 %v241_v14 }
  0x36   : > { %709 = vmatmul.mubr.msk.f32.vlgmr.msra.gmra.mxu1 %vm247_vm0, %v148_v15  ;;  %673 = vmatpush3.msra.mxu0 %v225_v16 }
  0x37   : > { %674 = vmatprep.subr.mxu0 %v240_v17 }
  0x38   : > { %675 = vmatpush3.msra.mxu0 %v224_v18 }
  0x39   : > { %676 = vmatprep.subr.mxu0 %v239_v19 }
  0x3a   : > { %677 = vmatpush3.msra.mxu0 %v223_v20 }
  0x3b   : > { %678 = vmatprep.subr.mxu0 %v238_v21 }
  0x3c   : > { %679 = vmatpush3.msra.mxu0 %v222_v22 }
  0x3d   : > { %680 = vmatprep.subr.mxu0 %v237_v23 }
  0x3e   : > { %681 = vmatpush3.msra.mxu0 %v221_v24 }
  0x3f   : > { %682 = vmatprep.subr.mxu0 %v236_v25 }
  0x40   : > { %683 = vmatpush3.msra.mxu0 %v220_v26 }
  0x41   : > { %684 = vmatprep.subr.mxu0 %v235_v27 }
  0x42   : > { %685 = vmatpush3.msra.mxu0 %v219_v28 }
  0x43   : > { %686 = vmatprep.subr.mxu0 %v234_v29 }
  0x44   : > { %687 = vmatpush3.msra.mxu0 %v218_v30 }
  0x45   : > { %688 = vmatprep.subr.mxu0 %v233_v31 }
  0x46   : > { %689 = vmatpush3.msra.mxu0 %v217_v32 }
  0x47   : > { %690 = vmatprep.subr.mxu0 %v232_v33 }
  0x48   : > { %691 = vmatpush3.msra.mxu0 %v216_v34 }
  0x49   : > { %692 = vmatprep.subr.mxu0 %v231_v35 }
  0x4a   : > { %693 = vmatpush3.msra.mxu0 %v215_v36 }
  0x4b   : > { %694 = vmatprep.subr.mxu0 %v230_v37 }
  0x4c   : > { %695 = vmatpush3.msra.mxu0 %v214_v38 }
  0x4d   : > { %696 = vmatprep.subr.mxu0 %v229_v39 }
  0x4e   : > { %697 = vmatpush3.msra.mxu0 %v213_v40 }
  0x4f   : > { %456 = vmatmul.mubr.f32.vlgmr.msra.gmra.mxu0 %v146_v41 }
  0xee   : > { %v628_v46 = vpop.f32.mrf.mxu0 }
  0xef   : > { %v663_v42 = vpop.f32.mrf.mxu1 }
  0xf0   : > { %v629_v47 = vpop.f32.mrf.mxu0 }
  0xf1   : > { %v664_v43 = vpop.f32.mrf.mxu1  ;;  %v630_v48 = vadd.f32 %v629_v47, %v628_v46 }
  0xf2   : > { %v665_v49 = vadd.f32 %v664_v43, %v663_v42 }
  0xf4   : > { %v388_v52 = vadd.f32 %v665_v49, %v630_v48 }
  0xf6   : > { %v527_v44 = vpop.f32.mrf.mxu1 }
  0xf8   : > { %v710_v45 = vpop.f32.mrf.mxu1 }
 0x10f   : > { %v698_v50 = vpop.f32.mrf.mxu0 }
 0x111   : > { %v699_v51 = vpop.f32.mrf.mxu0 }
 0x112   : > { %v700_v53 = vadd.f32 %v699_v51, %v698_v50 }
 0x114   : > { %v458_v54 = vadd.f32 %v700_v53, %v388_v52 }
 0x116   : > { %v528_v55 = vadd.f32 %v527_v44, %v458_v54 }
 0x118   : > { %532 = vst.msk [vmem:[%s141_s7] sm:$0xff] %vm531_vm2, %v528_v55 }
 0x119 PF: > { %s12_s9 = sadd.s32 1, %s728_s9  }
 0x11a   : > { %p9_p4 = scmp.ge.s32.totalorder %s12_s9, 4  }
 0x11c   :  { %11 = sbr.rel (!%p9_p4) target bundleno = 1 (0x1), region = 58 }

</bundles_post_ra>
